<compile_context>
chip_gen: v7x
topology: tpu7x:2x2x1
jax: 0.10.0
libtpu: 0.0.40
codegen_flags: <defaults>
</compile_context>

<pallas_src>
import functools

import jax
import jax.numpy as jnp
from jax.experimental import pallas as pl
from jax.experimental.pallas import tpu as pltpu


def _embed_pe_kernel(tok_ref, pe_ref, emb_hbm, out_ref, rows, sems,
                     *, seq_len, ts, inflight):
    # tok_ref: (B*S,)    int32 in SMEM (scalar prefetch)
    # pe_ref:  (TS, D)   f32 VMEM  -- PE rows for this sequence tile
    # emb_hbm: (V, D)    f32 HBM   -- full embedding table, stays in HBM
    # out_ref: (1, TS, D) f32 VMEM
    # rows:    (TS, D)   f32 VMEM scratch -- gathered embedding rows
    # sems:    (inflight,) DMA semaphores
    b = pl.program_id(0)
    s = pl.program_id(1)
    base = b * seq_len + s * ts
    vocab = emb_hbm.shape[0]

    def row_copy(i, slot):
        tok = tok_ref[base + i]
        tok = jnp.clip(tok, 0, vocab - 1)  # nn.Embedding would error; clamp instead of OOB DMA
        return pltpu.make_async_copy(
            emb_hbm.at[pl.ds(tok, 1)],     # (1, D) row in HBM
            rows.at[pl.ds(i, 1)],          # (1, D) slot in VMEM scratch
            sems.at[slot],
        )

    # Prime the DMA pipeline with up to `inflight` outstanding row fetches.
    n_prime = min(inflight, ts)
    for i in range(n_prime):               # static unrolled prime loop
        row_copy(i, i % inflight).start()

    # Rolling window: wait for row i, immediately issue row i+inflight.
    @pl.loop(0, ts)
    def _(i):
        slot = i % inflight
        row_copy(i, slot).wait()

        @pl.when(i + inflight < ts)
        def _():
            row_copy(i + inflight, slot).start()

    out_ref[0] = (rows[...] + pe_ref[...]).astype(out_ref.dtype)


def sinusoidal_pe(seq_len: int, d_model: int, dtype=jnp.float32):
    pos = jnp.arange(seq_len, dtype=jnp.float32)[:, None]          # (S, 1)
    i = jnp.arange(0, d_model, 2, dtype=jnp.float32)               # (D/2,)
    div = jnp.exp(-jnp.log(10000.0) * i / d_model)                 # (D/2,)
    pe = jnp.zeros((seq_len, d_model), jnp.float32)
    pe = pe.at[:, 0::2].set(jnp.sin(pos * div))
    pe = pe.at[:, 1::2].set(jnp.cos(pos * div))
    return pe.astype(dtype)


def _choose_seq_tile(seq_len: int) -> int:
    """Largest tile that divides S, capped at 512, multiple of 8 when possible."""
    if seq_len <= 512:
        return seq_len
    for d in range(512, 7, -1):
        if seq_len % d == 0 and d % 8 == 0:
            return d
    return seq_len


def text_and_position_embed(tokens, emb_table, pe):
    """tokens: (B, S) int32, emb_table: (V, D) f32, pe: (S, D) f32 -> (B, S, D) f32."""
    B, S = tokens.shape
    V, D = emb_table.shape
    assert pe.shape == (S, D)

    ts = _choose_seq_tile(S)
    inflight = min(8, ts)
    grid = (B, S // ts)

    kernel = functools.partial(_embed_pe_kernel, seq_len=S, ts=ts, inflight=inflight)
    tok_flat = tokens.reshape(-1).astype(jnp.int32)

    return pl.pallas_call(
        kernel,
        out_shape=jax.ShapeDtypeStruct((B, S, D), emb_table.dtype),
        grid_spec=pltpu.PrefetchScalarGridSpec(
            num_scalar_prefetch=1,                                   # tokens -> SMEM
            grid=grid,
            in_specs=[
                pl.BlockSpec((ts, D), lambda b, s, tok: (s, 0)),     # PE tile (VMEM)
                pl.BlockSpec(memory_space=pl.ANY),                   # embedding table (HBM)
            ],
            out_specs=pl.BlockSpec((1, ts, D), lambda b, s, tok: (b, s, 0)),
            scratch_shapes=[
                pltpu.VMEM((ts, D), emb_table.dtype),                # gathered rows
                pltpu.SemaphoreType.DMA((inflight,)),                # row-DMA sems
            ],
        ),
        compiler_params=pltpu.CompilerParams(
            dimension_semantics=("parallel", "parallel"),
        ),
    )(tok_flat, pe, emb_table)


if __name__ == "__main__":
    # Small, deterministic config
    token_size = 64    # vocabulary size
    d_model = 32
    batch = 2
    seq = 8

    key = jax.random.PRNGKey(0)
    k_emb, k_tok = jax.random.split(key)

    # Deterministic "parameters" (nn.Embedding weight ~ N(0, 1))
    emb_table = jax.random.normal(k_emb, (token_size, d_model), dtype=jnp.float32)
    pe = sinusoidal_pe(seq, d_model)

    # Deterministic input token ids
    tokens = jax.random.randint(k_tok, (batch, seq), 0, token_size, dtype=jnp.int32)

    out = jax.block_until_ready(text_and_position_embed(tokens, emb_table, pe))

    # Reference in plain JAX: embedding lookup + PE add
    ref = emb_table[tokens] + pe[None, :, :]
    assert out.shape == (batch, seq, d_model)
    assert jnp.allclose(out, ref, atol=1e-5, rtol=1e-5), "mismatch vs reference"

    print("KERNEL_OK")
</pallas_src>

<mosaic_0001>
module attributes {stable_mosaic.version = 11 : i64} {
  func.func @_embed_pe_kernel(%arg0: i32, %arg1: i32, %arg2: memref<16xi32, #tpu.memory_space<smem>>, %arg3: memref<8x32xf32, #tpu.memory_space<vmem>>, %arg4: memref<64x32xf32, #tpu.memory_space<any>>, %arg5: memref<1x8x32xf32, #tpu.memory_space<vmem>>, %arg6: memref<8x32xf32, #tpu.memory_space<vmem>>, %arg7: memref<8x!tpu.dma_semaphore, #tpu.memory_space<semaphore_mem>>) attributes {dimension_semantics = [#tpu.dimension_semantics<parallel>, #tpu.dimension_semantics<parallel>], iteration_bounds = array<i64: 2, 1>, scalar_prefetch = 1 : i64, scratch_operands = 2 : i64, tpu.core_type = #tpu.core_type<tc>, window_params = [{transform_indices = @transform_0, window_bounds = array<i64: 8, 32>}, {}, {transform_indices = @transform_2, window_bounds = array<i64: 1, 8, 32>}]} {
    %c8_i32 = arith.constant 8 : i32
    %0 = arith.muli %arg0, %c8_i32 : i32
    %c8_i32_0 = arith.constant 8 : i32
    %1 = arith.muli %arg1, %c8_i32_0 : i32
    %2 = arith.addi %0, %1 : i32
    %c0_i32 = arith.constant 0 : i32
    %3 = arith.addi %2, %c0_i32 : i32
    %4 = arith.index_cast %3 : i32 to index
    %5 = memref.load %arg2[%4] : memref<16xi32, #tpu.memory_space<smem>>
    %c0_i32_1 = arith.constant 0 : i32
    %c63_i32 = arith.constant 63 : i32
    %6 = arith.maxsi %c0_i32_1, %5 : i32
    %7 = arith.minsi %c63_i32, %6 : i32
    %c0_i32_2 = arith.constant 0 : i32
    %c0_i32_3 = arith.constant 0 : i32
    %8 = tpu.memref_slice %arg4[%7, %c0_i32_3] : memref<64x32xf32, #tpu.memory_space<any>> -> memref<1x32xf32, #tpu.memory_space<any>>
    %c0_i32_4 = arith.constant 0 : i32
    %c0_i32_5 = arith.constant 0 : i32
    %9 = tpu.memref_slice %arg6[%c0_i32_4, %c0_i32_5] : memref<8x32xf32, #tpu.memory_space<vmem>> -> memref<1x32xf32, #tpu.memory_space<vmem>>
    %10 = tpu.memref_slice %arg7[%c0_i32_2] : memref<8x!tpu.dma_semaphore, #tpu.memory_space<semaphore_mem>> -> memref<1x!tpu.dma_semaphore, #tpu.memory_space<semaphore_mem>>
    %11 = tpu.memref_squeeze %10 : memref<1x!tpu.dma_semaphore, #tpu.memory_space<semaphore_mem>> -> memref<!tpu.dma_semaphore, #tpu.memory_space<semaphore_mem>>
    tpu.enqueue_dma source(%8 : memref<1x32xf32, #tpu.memory_space<any>>) target(%9 : memref<1x32xf32, #tpu.memory_space<vmem>>) target_semaphore(%11 : memref<!tpu.dma_semaphore, #tpu.memory_space<semaphore_mem>>)
    %c1_i32 = arith.constant 1 : i32
    %12 = arith.addi %2, %c1_i32 : i32
    %13 = arith.index_cast %12 : i32 to index
    %14 = memref.load %arg2[%13] : memref<16xi32, #tpu.memory_space<smem>>
    %c0_i32_6 = arith.constant 0 : i32
    %c63_i32_7 = arith.constant 63 : i32
    %15 = arith.maxsi %c0_i32_6, %14 : i32
    %16 = arith.minsi %c63_i32_7, %15 : i32
    %c1_i32_8 = arith.constant 1 : i32
    %c0_i32_9 = arith.constant 0 : i32
    %17 = tpu.memref_slice %arg4[%16, %c0_i32_9] : memref<64x32xf32, #tpu.memory_space<any>> -> memref<1x32xf32, #tpu.memory_space<any>>
    %c1_i32_10 = arith.constant 1 : i32
    %c0_i32_11 = arith.constant 0 : i32
    %18 = tpu.memref_slice %arg6[%c1_i32_10, %c0_i32_11] : memref<8x32xf32, #tpu.memory_space<vmem>> -> memref<1x32xf32, #tpu.memory_space<vmem>>
    %19 = tpu.memref_slice %arg7[%c1_i32_8] : memref<8x!tpu.dma_semaphore, #tpu.memory_space<semaphore_mem>> -> memref<1x!tpu.dma_semaphore, #tpu.memory_space<semaphore_mem>>
    %20 = tpu.memref_squeeze %19 : memref<1x!tpu.dma_semaphore, #tpu.memory_space<semaphore_mem>> -> memref<!tpu.dma_semaphore, #tpu.memory_space<semaphore_mem>>
    tpu.enqueue_dma source(%17 : memref<1x32xf32, #tpu.memory_space<any>>) target(%18 : memref<1x32xf32, #tpu.memory_space<vmem>>) target_semaphore(%20 : memref<!tpu.dma_semaphore, #tpu.memory_space<semaphore_mem>>)
    %c2_i32 = arith.constant 2 : i32
    %21 = arith.addi %2, %c2_i32 : i32
    %22 = arith.index_cast %21 : i32 to index
    %23 = memref.load %arg2[%22] : memref<16xi32, #tpu.memory_space<smem>>
    %c0_i32_12 = arith.constant 0 : i32
    %c63_i32_13 = arith.constant 63 : i32
    %24 = arith.maxsi %c0_i32_12, %23 : i32
    %25 = arith.minsi %c63_i32_13, %24 : i32
    %c2_i32_14 = arith.constant 2 : i32
    %c0_i32_15 = arith.constant 0 : i32
    %26 = tpu.memref_slice %arg4[%25, %c0_i32_15] : memref<64x32xf32, #tpu.memory_space<any>> -> memref<1x32xf32, #tpu.memory_space<any>>
    %c2_i32_16 = arith.constant 2 : i32
    %c0_i32_17 = arith.constant 0 : i32
    %27 = tpu.memref_slice %arg6[%c2_i32_16, %c0_i32_17] : memref<8x32xf32, #tpu.memory_space<vmem>> -> memref<1x32xf32, #tpu.memory_space<vmem>>
    %28 = tpu.memref_slice %arg7[%c2_i32_14] : memref<8x!tpu.dma_semaphore, #tpu.memory_space<semaphore_mem>> -> memref<1x!tpu.dma_semaphore, #tpu.memory_space<semaphore_mem>>
    %29 = tpu.memref_squeeze %28 : memref<1x!tpu.dma_semaphore, #tpu.memory_space<semaphore_mem>> -> memref<!tpu.dma_semaphore, #tpu.memory_space<semaphore_mem>>
    tpu.enqueue_dma source(%26 : memref<1x32xf32, #tpu.memory_space<any>>) target(%27 : memref<1x32xf32, #tpu.memory_space<vmem>>) target_semaphore(%29 : memref<!tpu.dma_semaphore, #tpu.memory_space<semaphore_mem>>)
    %c3_i32 = arith.constant 3 : i32
    %30 = arith.addi %2, %c3_i32 : i32
    %31 = arith.index_cast %30 : i32 to index
    %32 = memref.load %arg2[%31] : memref<16xi32, #tpu.memory_space<smem>>
    %c0_i32_18 = arith.constant 0 : i32
    %c63_i32_19 = arith.constant 63 : i32
    %33 = arith.maxsi %c0_i32_18, %32 : i32
    %34 = arith.minsi %c63_i32_19, %33 : i32
    %c3_i32_20 = arith.constant 3 : i32
    %c0_i32_21 = arith.constant 0 : i32
    %35 = tpu.memref_slice %arg4[%34, %c0_i32_21] : memref<64x32xf32, #tpu.memory_space<any>> -> memref<1x32xf32, #tpu.memory_space<any>>
    %c3_i32_22 = arith.constant 3 : i32
    %c0_i32_23 = arith.constant 0 : i32
    %36 = tpu.memref_slice %arg6[%c3_i32_22, %c0_i32_23] : memref<8x32xf32, #tpu.memory_space<vmem>> -> memref<1x32xf32, #tpu.memory_space<vmem>>
    %37 = tpu.memref_slice %arg7[%c3_i32_20] : memref<8x!tpu.dma_semaphore, #tpu.memory_space<semaphore_mem>> -> memref<1x!tpu.dma_semaphore, #tpu.memory_space<semaphore_mem>>
    %38 = tpu.memref_squeeze %37 : memref<1x!tpu.dma_semaphore, #tpu.memory_space<semaphore_mem>> -> memref<!tpu.dma_semaphore, #tpu.memory_space<semaphore_mem>>
    tpu.enqueue_dma source(%35 : memref<1x32xf32, #tpu.memory_space<any>>) target(%36 : memref<1x32xf32, #tpu.memory_space<vmem>>) target_semaphore(%38 : memref<!tpu.dma_semaphore, #tpu.memory_space<semaphore_mem>>)
    %c4_i32 = arith.constant 4 : i32
    %39 = arith.addi %2, %c4_i32 : i32
    %40 = arith.index_cast %39 : i32 to index
    %41 = memref.load %arg2[%40] : memref<16xi32, #tpu.memory_space<smem>>
    %c0_i32_24 = arith.constant 0 : i32
    %c63_i32_25 = arith.constant 63 : i32
    %42 = arith.maxsi %c0_i32_24, %41 : i32
    %43 = arith.minsi %c63_i32_25, %42 : i32
    %c4_i32_26 = arith.constant 4 : i32
    %c0_i32_27 = arith.constant 0 : i32
    %44 = tpu.memref_slice %arg4[%43, %c0_i32_27] : memref<64x32xf32, #tpu.memory_space<any>> -> memref<1x32xf32, #tpu.memory_space<any>>
    %c4_i32_28 = arith.constant 4 : i32
    %c0_i32_29 = arith.constant 0 : i32
    %45 = tpu.memref_slice %arg6[%c4_i32_28, %c0_i32_29] : memref<8x32xf32, #tpu.memory_space<vmem>> -> memref<1x32xf32, #tpu.memory_space<vmem>>
    %46 = tpu.memref_slice %arg7[%c4_i32_26] : memref<8x!tpu.dma_semaphore, #tpu.memory_space<semaphore_mem>> -> memref<1x!tpu.dma_semaphore, #tpu.memory_space<semaphore_mem>>
    %47 = tpu.memref_squeeze %46 : memref<1x!tpu.dma_semaphore, #tpu.memory_space<semaphore_mem>> -> memref<!tpu.dma_semaphore, #tpu.memory_space<semaphore_mem>>
    tpu.enqueue_dma source(%44 : memref<1x32xf32, #tpu.memory_space<any>>) target(%45 : memref<1x32xf32, #tpu.memory_space<vmem>>) target_semaphore(%47 : memref<!tpu.dma_semaphore, #tpu.memory_space<semaphore_mem>>)
    %c5_i32 = arith.constant 5 : i32
    %48 = arith.addi %2, %c5_i32 : i32
    %49 = arith.index_cast %48 : i32 to index
    %50 = memref.load %arg2[%49] : memref<16xi32, #tpu.memory_space<smem>>
    %c0_i32_30 = arith.constant 0 : i32
    %c63_i32_31 = arith.constant 63 : i32
    %51 = arith.maxsi %c0_i32_30, %50 : i32
    %52 = arith.minsi %c63_i32_31, %51 : i32
    %c5_i32_32 = arith.constant 5 : i32
    %c0_i32_33 = arith.constant 0 : i32
    %53 = tpu.memref_slice %arg4[%52, %c0_i32_33] : memref<64x32xf32, #tpu.memory_space<any>> -> memref<1x32xf32, #tpu.memory_space<any>>
    %c5_i32_34 = arith.constant 5 : i32
    %c0_i32_35 = arith.constant 0 : i32
    %54 = tpu.memref_slice %arg6[%c5_i32_34, %c0_i32_35] : memref<8x32xf32, #tpu.memory_space<vmem>> -> memref<1x32xf32, #tpu.memory_space<vmem>>
    %55 = tpu.memref_slice %arg7[%c5_i32_32] : memref<8x!tpu.dma_semaphore, #tpu.memory_space<semaphore_mem>> -> memref<1x!tpu.dma_semaphore, #tpu.memory_space<semaphore_mem>>
    %56 = tpu.memref_squeeze %55 : memref<1x!tpu.dma_semaphore, #tpu.memory_space<semaphore_mem>> -> memref<!tpu.dma_semaphore, #tpu.memory_space<semaphore_mem>>
    tpu.enqueue_dma source(%53 : memref<1x32xf32, #tpu.memory_space<any>>) target(%54 : memref<1x32xf32, #tpu.memory_space<vmem>>) target_semaphore(%56 : memref<!tpu.dma_semaphore, #tpu.memory_space<semaphore_mem>>)
    %c6_i32 = arith.constant 6 : i32
    %57 = arith.addi %2, %c6_i32 : i32
    %58 = arith.index_cast %57 : i32 to index
    %59 = memref.load %arg2[%58] : memref<16xi32, #tpu.memory_space<smem>>
    %c0_i32_36 = arith.constant 0 : i32
    %c63_i32_37 = arith.constant 63 : i32
    %60 = arith.maxsi %c0_i32_36, %59 : i32
    %61 = arith.minsi %c63_i32_37, %60 : i32
    %c6_i32_38 = arith.constant 6 : i32
    %c0_i32_39 = arith.constant 0 : i32
    %62 = tpu.memref_slice %arg4[%61, %c0_i32_39] : memref<64x32xf32, #tpu.memory_space<any>> -> memref<1x32xf32, #tpu.memory_space<any>>
    %c6_i32_40 = arith.constant 6 : i32
    %c0_i32_41 = arith.constant 0 : i32
    %63 = tpu.memref_slice %arg6[%c6_i32_40, %c0_i32_41] : memref<8x32xf32, #tpu.memory_space<vmem>> -> memref<1x32xf32, #tpu.memory_space<vmem>>
    %64 = tpu.memref_slice %arg7[%c6_i32_38] : memref<8x!tpu.dma_semaphore, #tpu.memory_space<semaphore_mem>> -> memref<1x!tpu.dma_semaphore, #tpu.memory_space<semaphore_mem>>
    %65 = tpu.memref_squeeze %64 : memref<1x!tpu.dma_semaphore, #tpu.memory_space<semaphore_mem>> -> memref<!tpu.dma_semaphore, #tpu.memory_space<semaphore_mem>>
    tpu.enqueue_dma source(%62 : memref<1x32xf32, #tpu.memory_space<any>>) target(%63 : memref<1x32xf32, #tpu.memory_space<vmem>>) target_semaphore(%65 : memref<!tpu.dma_semaphore, #tpu.memory_space<semaphore_mem>>)
    %c7_i32 = arith.constant 7 : i32
    %66 = arith.addi %2, %c7_i32 : i32
    %67 = arith.index_cast %66 : i32 to index
    %68 = memref.load %arg2[%67] : memref<16xi32, #tpu.memory_space<smem>>
    %c0_i32_42 = arith.constant 0 : i32
    %c63_i32_43 = arith.constant 63 : i32
    %69 = arith.maxsi %c0_i32_42, %68 : i32
    %70 = arith.minsi %c63_i32_43, %69 : i32
    %c7_i32_44 = arith.constant 7 : i32
    %c0_i32_45 = arith.constant 0 : i32
    %71 = tpu.memref_slice %arg4[%70, %c0_i32_45] : memref<64x32xf32, #tpu.memory_space<any>> -> memref<1x32xf32, #tpu.memory_space<any>>
    %c7_i32_46 = arith.constant 7 : i32
    %c0_i32_47 = arith.constant 0 : i32
    %72 = tpu.memref_slice %arg6[%c7_i32_46, %c0_i32_47] : memref<8x32xf32, #tpu.memory_space<vmem>> -> memref<1x32xf32, #tpu.memory_space<vmem>>
    %73 = tpu.memref_slice %arg7[%c7_i32_44] : memref<8x!tpu.dma_semaphore, #tpu.memory_space<semaphore_mem>> -> memref<1x!tpu.dma_semaphore, #tpu.memory_space<semaphore_mem>>
    %74 = tpu.memref_squeeze %73 : memref<1x!tpu.dma_semaphore, #tpu.memory_space<semaphore_mem>> -> memref<!tpu.dma_semaphore, #tpu.memory_space<semaphore_mem>>
    tpu.enqueue_dma source(%71 : memref<1x32xf32, #tpu.memory_space<any>>) target(%72 : memref<1x32xf32, #tpu.memory_space<vmem>>) target_semaphore(%74 : memref<!tpu.dma_semaphore, #tpu.memory_space<semaphore_mem>>)
    %c0_i32_48 = arith.constant 0 : i32
    %c8_i32_49 = arith.constant 8 : i32
    %75 = arith.addi %c0_i32_48, %c8_i32_49 : i32
    %c1_i32_50 = arith.constant 1 : i32
    scf.for %arg8 = %c0_i32_48 to %75 step %c1_i32_50  : i32 {
      %c1_i32_58 = arith.constant 1 : i32
      %82 = arith.muli %arg8, %c1_i32_58 : i32
      %c0_i32_59 = arith.constant 0 : i32
      %83 = arith.addi %c0_i32_59, %82 : i32
      %c8_i32_60 = arith.constant 8 : i32
      %c0_i32_61 = arith.constant 0 : i32
      %84 = arith.cmpi eq, %c8_i32_60, %c0_i32_61 : i32
      %c1_i32_62 = arith.constant 1 : i32
      %85 = arith.select %84, %c1_i32_62, %c8_i32_60 : i32
      %86 = arith.remsi %83, %85 : i32
      %c0_i32_63 = arith.constant 0 : i32
      %87 = arith.cmpi ne, %86, %c0_i32_63 : i32
      %c0_i32_64 = arith.constant 0 : i32
      %88 = arith.cmpi slt, %86, %c0_i32_64 : i32
      %c0_i32_65 = arith.constant 0 : i32
      %89 = arith.cmpi slt, %85, %c0_i32_65 : i32
      %90 = arith.xori %88, %89 : i1
      %91 = arith.andi %90, %87 : i1
      %92 = arith.addi %86, %85 : i32
      %93 = arith.select %91, %92, %86 : i32
      %94 = arith.addi %2, %83 : i32
      %95 = arith.index_cast %94 : i32 to index
      %96 = memref.load %arg2[%95] : memref<16xi32, #tpu.memory_space<smem>>
      %c0_i32_66 = arith.constant 0 : i32
      %c63_i32_67 = arith.constant 63 : i32
      %97 = arith.maxsi %c0_i32_66, %96 : i32
      %98 = arith.minsi %c63_i32_67, %97 : i32
      %c0_i32_68 = arith.constant 0 : i32
      %99 = tpu.memref_slice %arg4[%98, %c0_i32_68] : memref<64x32xf32, #tpu.memory_space<any>> -> memref<1x32xf32, #tpu.memory_space<any>>
      %c0_i32_69 = arith.constant 0 : i32
      %100 = tpu.memref_slice %arg6[%83, %c0_i32_69] : memref<8x32xf32, #tpu.memory_space<vmem>> -> memref<1x32xf32, #tpu.memory_space<vmem>>
      %101 = tpu.memref_slice %arg7[%93] : memref<8x!tpu.dma_semaphore, #tpu.memory_space<semaphore_mem>> -> memref<1x!tpu.dma_semaphore, #tpu.memory_space<semaphore_mem>>
      %102 = tpu.memref_squeeze %101 : memref<1x!tpu.dma_semaphore, #tpu.memory_space<semaphore_mem>> -> memref<!tpu.dma_semaphore, #tpu.memory_space<semaphore_mem>>
      tpu.wait_dma2 semaphore(%102 : memref<!tpu.dma_semaphore, #tpu.memory_space<semaphore_mem>>) src(%99 : memref<1x32xf32, #tpu.memory_space<any>>) dst(%100 : memref<1x32xf32, #tpu.memory_space<vmem>>)
      %c8_i32_70 = arith.constant 8 : i32
      %103 = arith.addi %83, %c8_i32_70 : i32
      %c8_i32_71 = arith.constant 8 : i32
      %104 = arith.cmpi slt, %103, %c8_i32_71 : i32
      %105 = arith.extui %104 : i1 to i32
      %c0_i32_72 = arith.constant 0 : i32
      %106 = arith.cmpi ne, %105, %c0_i32_72 : i32
      scf.if %106 {
        %c8_i32_73 = arith.constant 8 : i32
        %107 = arith.addi %83, %c8_i32_73 : i32
        %108 = arith.addi %2, %107 : i32
        %109 = arith.index_cast %108 : i32 to index
        %110 = memref.load %arg2[%109] : memref<16xi32, #tpu.memory_space<smem>>
        %c0_i32_74 = arith.constant 0 : i32
        %c63_i32_75 = arith.constant 63 : i32
        %111 = arith.maxsi %c0_i32_74, %110 : i32
        %112 = arith.minsi %c63_i32_75, %111 : i32
        %c0_i32_76 = arith.constant 0 : i32
        %113 = tpu.memref_slice %arg4[%112, %c0_i32_76] : memref<64x32xf32, #tpu.memory_space<any>> -> memref<1x32xf32, #tpu.memory_space<any>>
        %c0_i32_77 = arith.constant 0 : i32
        %114 = tpu.memref_slice %arg6[%107, %c0_i32_77] : memref<8x32xf32, #tpu.memory_space<vmem>> -> memref<1x32xf32, #tpu.memory_space<vmem>>
        %115 = tpu.memref_slice %arg7[%93] : memref<8x!tpu.dma_semaphore, #tpu.memory_space<semaphore_mem>> -> memref<1x!tpu.dma_semaphore, #tpu.memory_space<semaphore_mem>>
        %116 = tpu.memref_squeeze %115 : memref<1x!tpu.dma_semaphore, #tpu.memory_space<semaphore_mem>> -> memref<!tpu.dma_semaphore, #tpu.memory_space<semaphore_mem>>
        tpu.enqueue_dma source(%113 : memref<1x32xf32, #tpu.memory_space<any>>) target(%114 : memref<1x32xf32, #tpu.memory_space<vmem>>) target_semaphore(%116 : memref<!tpu.dma_semaphore, #tpu.memory_space<semaphore_mem>>)
      } else {
      }
    }
    %c8_i32_51 = arith.constant 8 : i32
    %c0 = arith.constant 0 : index
    %c0_52 = arith.constant 0 : index
    %76 = vector.load %arg6[%c0, %c0_52] : memref<8x32xf32, #tpu.memory_space<vmem>>, vector<8x32xf32>
    %c0_53 = arith.constant 0 : index
    %c0_54 = arith.constant 0 : index
    %77 = vector.load %arg3[%c0_53, %c0_54] : memref<8x32xf32, #tpu.memory_space<vmem>>, vector<8x32xf32>
    %78 = arith.addf %76, %77 : vector<8x32xf32>
    %c0_55 = arith.constant 0 : index
    %c0_56 = arith.constant 0 : index
    %c0_57 = arith.constant 0 : index
    %79 = vector.load %arg5[%c0_55, %c0_56, %c0_57] : memref<1x8x32xf32, #tpu.memory_space<vmem>>, vector<1x8x32xf32>
    %80 = vector.shape_cast %79 : vector<1x8x32xf32> to vector<8x32xf32>
    %81 = vector.shape_cast %78 : vector<8x32xf32> to vector<1x8x32xf32>
    tpu.vector_store %arg5[%c0_55, %c0_56, %c0_57], %81 {strides = array<i32>} : memref<1x8x32xf32, #tpu.memory_space<vmem>>, vector<1x8x32xf32>,
    return
  }
  func.func @transform_0(%arg0: i32, %arg1: i32, %arg2: memref<16xi32, #tpu.memory_space<smem>>) -> (i32, i32) {
    %c0_i32 = arith.constant 0 : i32
    %c0_i32_0 = arith.constant 0 : i32
    return %arg1, %c0_i32 : i32, i32
  }
  func.func @transform_2(%arg0: i32, %arg1: i32, %arg2: memref<16xi32, #tpu.memory_space<smem>>) -> (i32, i32, i32) {
    %c0_i32 = arith.constant 0 : i32
    %c0_i32_0 = arith.constant 0 : i32
    return %arg0, %arg1, %c0_i32 : i32, i32, i32
  }
}

</mosaic_0001>

<bundles_post_ra>
// kernel: tpu_custom_call.1
= control target key start
LH: loop header
LB: loop body
LE: loop exit
PB: predicated region body
PF: predicated region fallthrough
CT: control target
= control target key end

     0   :  { %s1354_s0 = inlined_call_operand.vmem [shape: s32[16], index: 0, kind: input, shape index: {}]   ;;  %s1355_s1 = inlined_call_operand.vmem [shape: f32[8,32], index: 1, kind: input, shape index: {}]   ;;  %s1356_s2 = inlined_call_operand.vmem [shape: f32[64,32], index: 2, kind: input, shape index: {}]   ;;  %s1357_s3 = inlined_call_operand.hbm [shape: f32[2,8,32], index: 3, kind: output, shape index: {}]  }
   0x1   :  { %s8_s14 = sshll.u32 %s1354_s0, 4  ;;  %s9_s14 = int_to_ptr.vmem [resolvable:$true] %s8_s14 }
   0x2   :  { %s1052_s15 = scalar_lea.vmem %s9_s14, 16  ;;  %p1057_p1 = scmp.lt.s32.totalorder %s9_s14, %s9_s14 }
   0x3   :  { %p1053_p0 = scmp.ne.s32.totalorder %s9_s14, %s1052_s15  ;;  %p1058_p2 = scmp.lt.s32.totalorder %s1052_s15, %s1052_s15 }
   0x5   :  { %p1059_p3 = por %p1058_p2, %p1057_p1 }
   0x7   :  { %p1060_p4 = pnand %p1059_p3, %p1053_p0 }
   0x9   :  { %1063 = shalt.err (!%p1060_p4)  }
   0xa   :  { %s1156_s16 = smov [#allocation5]  }
   0xb   :  { %11 = dma.vmem_to_smem %s9_s14, 16, %s1156_s16, [#allocation4] }
   0xc   :  { %1120 = dma.done.wait [#allocation4], 16 }
   0xd   :  { %1121 = vsyncadd [#allocation4], 4294967280 }
   0xe   :  { %13 = sfence }
   0xf   :  { %14 = vsyncpa [#allocation7], 0 }
  0x10   :  { %16 = vsyncpa [#allocation7 + $0x1], 0  ;;  %s1181_s17 = smov 0   ;;  %s1183_s18 = smov 0  }
  0x11   :  { %s1185_s0 = smov 0   ;;  %s1187_s19 = smov 0  }
  0x12   :  { %s1189_s20 = smov 0   ;;  %s1191_s21 = smov 0  }
  0x13 LB: > { %s900_s22 = sadd.s32 4294967295, %s1150_s21   ;;  %s901_s23 = sadd.s32 4294967294, %s1150_s21   ;;  %s1150_s21 = sphi %s1191_s21, %s22_s21   ;;  %s1146_s20 = sphi %s1189_s20, %s1364_s20   ;;  %s1142_s19 = sphi %s1187_s19, %s1363_s19   ;;  %s1138_s0 = sphi %s1185_s0, %s1362_s0   ;;  %s1134_s18 = sphi %s1183_s18, %s1361_s18   ;;  %s1130_s17 = sphi %s1181_s17, %s1360_s17  }
  0x14   : > { %s34_s24 = sadd.s32 1, %s1146_s20  ;;  %s69_s25 = sadd.s32 1, %s1138_s0 }
  0x15   : > { %p36_p5 = scmp.ge.s32.totalorder %s34_s24, 2  ;;  %p79_p6 = scmp.ne.s32.totalorder %s1138_s0, %s1134_s18 }
  0x16   : > { %p80_p7 = scmp.eq.s32.totalorder %s900_s22, 1  ;;  %p85_p8 = scmp.ne.s32.totalorder %s1134_s18, %s1130_s17 }
  0x17   : > { %s1366_s24 = smov (%p36_p5, %s34_s24), 0  ;;  %p86_p10 = scmp.eq.s32.totalorder %s901_s23, 1 }
  0x18   : > { %p1221_p9 = por %p80_p7, %p79_p6  ;;  %s64_s27 = ssub.s32 %s1146_s20, %s1366_s24 }
  0x19   : > { %p904_p11 = scmp.ge.s32.totalorder %s1150_s21, 1  ;;  %p67_p12 = scmp.eq.s32.totalorder %s64_s27, 0 }
  0x1a   : > { %p1228_p13 = por %p86_p10, %p85_p8  ;;  %p111_p0 = scmp.lt.s32.totalorder %s1150_s21, 3 }
  0x1b   : > { %s1234_s29 = scalar_select %p67_p12, %s1138_s0, %s69_s25  }
  0x1c   : > { %p112_p1 = pnand %p904_p11, %p111_p0 }
  0x1d   : > { %s127_s30 = sand.u32 (!%p112_p1), 1, %s1134_s18   ;;  %s1238_s4 = sshll.u32 (!%p112_p1), %s1142_s19, 3 }
  0x1e   : > { %115 = sbr.rel (%p112_p1) target bundleno = 197 (0xc5), region = 24  ;;  %s1242_s5 = sshll.u32 (!%p112_p1), %s127_s30, 3 }
  0x1f   : > { %s137_s6 = sld [smem:[#allocation5 + %s1238_s4]] (!%p112_p1)  ;;  %s129_s10 = scalar_lea.vmem (!%p112_p1), [#allocation6], %s1242_s5 }
  0x25   : > { %p138_p2 = scmp.gt.s32.totalorder %s137_s6, 0  ;;  %p907_p3 = scmp.lt.s32.totalorder %s137_s6, 63 }
  0x27   : > { %s1368_s6 = smov (!%p138_p2, %s137_s6), 0 }
  0x28   : > { %s1370_s6 = smov (!%p907_p3, %s1368_s6), 63 }
  0x29   : > { %s142_s9 = scalar_lea.vmem %s1356_s2, %s1370_s6 }
  0x2a   : > { %v160_v0 = vld [vmem:[%s142_s9] sm:$0x1] }
  0x2b   : > { %161 = vst [vmem:[#allocation2] sm:$0x1] %v160_v0 }
  0x2c   : > { %186 = vsyncadd [#allocation3], 16  ;;  %s187_s11 = sadd.s32 1, %s1238_s4 }
  0x2d   : > { %s188_s12 = sld [smem:[#allocation5 + %s187_s11]] }
  0x33   : > { %p189_p4 = scmp.gt.s32.totalorder %s188_s12, 0  ;;  %p912_p5 = scmp.lt.s32.totalorder %s188_s12, 63 }
  0x35   : > { %s1372_s12 = smov (!%p189_p4, %s188_s12), 0 }
  0x36   : > { %s1374_s12 = smov (!%p912_p5, %s1372_s12), 63 }
  0x37   : > { %s193_s15 = scalar_lea.vmem %s1356_s2, %s1374_s12 }
  0x38   : > { %v213_v1 = vld [vmem:[%s193_s15] sm:$0x1] }
  0x39   : > { %214 = vst [vmem:[#allocation2 + $0x1] sm:$0x1] %v213_v1 }
  0x3a   : > { %239 = vsyncadd [#allocation3 + $0x1], 16  ;;  %s240_s16 = sadd.s32 2, %s1238_s4 }
  0x3b   : > { %s241_s22 = sld [smem:[#allocation5 + %s240_s16]] }
  0x41   : > { %p242_p6 = scmp.gt.s32.totalorder %s241_s22, 0  ;;  %p917_p7 = scmp.lt.s32.totalorder %s241_s22, 63 }
  0x43   : > { %s1376_s22 = smov (!%p242_p6, %s241_s22), 0 }
  0x44   : > { %s1378_s22 = smov (!%p917_p7, %s1376_s22), 63 }
  0x45   : > { %s246_s27 = scalar_lea.vmem %s1356_s2, %s1378_s22 }
  0x46   : > { %v266_v2 = vld [vmem:[%s246_s27] sm:$0x1] }
  0x47   : > { %267 = vst [vmem:[#allocation2 + $0x2] sm:$0x1] %v266_v2 }
  0x48   : > { %292 = vsyncadd [#allocation3 + $0x2], 16  ;;  %s293_s6 = sadd.s32 3, %s1238_s4 }
  0x49   : > { %s294_s7 = sld [smem:[#allocation5 + %s293_s6]] }
  0x4f   : > { %p295_p8 = scmp.gt.s32.totalorder %s294_s7, 0  ;;  %p922_p10 = scmp.lt.s32.totalorder %s294_s7, 63 }
  0x51   : > { %s1380_s7 = smov (!%p295_p8, %s294_s7), 0 }
  0x52   : > { %s1382_s7 = smov (!%p922_p10, %s1380_s7), 63 }
  0x53   : > { %s299_s11 = scalar_lea.vmem %s1356_s2, %s1382_s7 }
  0x54   : > { %v319_v3 = vld [vmem:[%s299_s11] sm:$0x1] }
  0x55   : > { %320 = vst [vmem:[#allocation2 + $0x3] sm:$0x1] %v319_v3 }
  0x56   : > { %345 = vsyncadd [#allocation3 + $0x3], 16  ;;  %s346_s12 = sadd.s32 4, %s1238_s4 }
  0x57   : > { %s347_s13 = sld [smem:[#allocation5 + %s346_s12]] }
  0x5d   : > { %p348_p11 = scmp.gt.s32.totalorder %s347_s13, 0  ;;  %p927_p12 = scmp.lt.s32.totalorder %s347_s13, 63 }
  0x5f   : > { %s1384_s13 = smov (!%p348_p11, %s347_s13), 0 }
  0x60   : > { %s1386_s13 = smov (!%p927_p12, %s1384_s13), 63 }
  0x61   : > { %s352_s16 = scalar_lea.vmem %s1356_s2, %s1386_s13 }
  0x62   : > { %v372_v4 = vld [vmem:[%s352_s16] sm:$0x1] }
  0x63   : > { %373 = vst [vmem:[#allocation2 + $0x4] sm:$0x1] %v372_v4 }
  0x64   : > { %398 = vsyncadd [#allocation3 + $0x4], 16  ;;  %s399_s22 = sadd.s32 5, %s1238_s4 }
  0x65   : > { %s400_s23 = sld [smem:[#allocation5 + %s399_s22]] }
  0x6b   : > { %p401_p0 = scmp.gt.s32.totalorder %s400_s23, 0  ;;  %p932_p1 = scmp.lt.s32.totalorder %s400_s23, 63 }
  0x6d   : > { %s1388_s23 = smov (!%p401_p0, %s400_s23), 0 }
  0x6e   : > { %s1390_s23 = smov (!%p932_p1, %s1388_s23), 63 }
  0x6f   : > { %s405_s6 = scalar_lea.vmem %s1356_s2, %s1390_s23 }
  0x70   : > { %v425_v5 = vld [vmem:[%s405_s6] sm:$0x1] }
  0x71   : > { %426 = vst [vmem:[#allocation2 + $0x5] sm:$0x1] %v425_v5 }
  0x72   : > { %451 = vsyncadd [#allocation3 + $0x5], 16  ;;  %s452_s7 = sadd.s32 6, %s1238_s4 }
  0x73   : > { %s453_s8 = sld [smem:[#allocation5 + %s452_s7]] }
  0x79   : > { %p454_p2 = scmp.gt.s32.totalorder %s453_s8, 0  ;;  %p937_p3 = scmp.lt.s32.totalorder %s453_s8, 63 }
  0x7b   : > { %s1392_s8 = smov (!%p454_p2, %s453_s8), 0 }
  0x7c   : > { %s1394_s8 = smov (!%p937_p3, %s1392_s8), 63 }
  0x7d   : > { %s458_s12 = scalar_lea.vmem %s1356_s2, %s1394_s8 }
  0x7e   : > { %v478_v6 = vld [vmem:[%s458_s12] sm:$0x1] }
  0x7f   : > { %479 = vst [vmem:[#allocation2 + $0x6] sm:$0x1] %v478_v6 }
  0x80   : > { %504 = vsyncadd [#allocation3 + $0x6], 16  ;;  %s505_s13 = sadd.s32 7, %s1238_s4 }
  0x81   : > { %s506_s14 = sld [smem:[#allocation5 + %s505_s13]] }
  0x87   : > { %p507_p4 = scmp.gt.s32.totalorder %s506_s14, 0  ;;  %p942_p5 = scmp.lt.s32.totalorder %s506_s14, 63 }
  0x89   : > { %s1396_s14 = smov (!%p507_p4, %s506_s14), 0 }
  0x8a   : > { %s1398_s14 = smov (!%p942_p5, %s1396_s14), 63 }
  0x8b   : > { %s511_s22 = scalar_lea.vmem %s1356_s2, %s1398_s14 }
  0x8c   : > { %v531_v7 = vld [vmem:[%s511_s22] sm:$0x1] }
  0x8d   : > { %532 = vst [vmem:[#allocation2 + $0x7] sm:$0x1] %v531_v7 }
  0x8e   : > { %557 = vsyncadd [#allocation3 + $0x7], 16  ;;  %s1277_s23 = smov 0  }
  0x8f LB: >> { %p564_p6 = scmp.lt.s32.totalorder %s1154_s23, 0  ;;  %s565_s25 = ssub.s32 0, %s1154_s23  ;;  %s1154_s23 = sphi %s1277_s23, %s563_s23  }
  0x90   : >> { %s947_s27 = smin.u32 %s1154_s23, %s565_s25 }
  0x91   : >> { %s567_s6 = sand.u32 7, %s947_s27  }
  0x92   : >> { %s568_s7 = ssub.s32 0, %s567_s6 }
  0x93   : >> { %s1400_s7 = smov (!%p564_p6, %s568_s7), %s567_s6 }
  0x94   : >> { %p949_p7 = scmp.lt.s32.totalorder %s1400_s7, 0  ;;  %s574_s8 = sadd.s32 8, %s1400_s7 }
  0x96   : >> { %s1402_s8 = smov (!%p949_p7, %s574_s8), %s1400_s7 }
  0x97   : >> { %s578_s9 = scalar_lea.sflag [#allocation3], %s1402_s8 }
  0x98   : >> { %1122 = dma.done.wait %s578_s9, 16 }
  0x99   : >> { %1123 = vsyncadd %s578_s9, 4294967280  ;;  %s582_s11 = sadd.s32 8, %s1154_s23 }
  0x9a   : >> { %p950_p8 = scmp.ge.s32.totalorder %s582_s11, 8 }
  0x9b   : >> { %s587_s12 = sadd.s32 (!%p950_p8), %s1238_s4, %s582_s11  ;;  %s777_s22 = scalar_lea.vmem (!%p950_p8), [#allocation2], %s1154_s23 }
  0x9c   : >> { %586 = sbr.rel (%p950_p8) target bundleno = 170 (0xaa), region = 275  ;;  %s588_s13 = sld [smem:[#allocation5 + %s587_s12]] (!%p950_p8) }
  0xa2   : >> { %p589_p10 = scmp.gt.s32.totalorder (!%p950_p8), %s588_s13, 0  ;;  %p951_p11 = scmp.lt.s32.totalorder (!%p950_p8), %s588_s13, 63 }
  0xa4   : >> { %s1404_s13 = smov (!%p589_p10, %s588_s13), 0 }
  0xa5   : >> { %s1406_s13 = smov (!%p951_p11, %s1404_s13), 63 }
  0xa6   : >> { %s593_s16 = scalar_lea.vmem %s1356_s2, %s1406_s13 }
  0xa7   : >> { %v612_v8 = vld [vmem:[%s593_s16] sm:$0x1] }
  0xa8   : >> { %957 = vst [vmem:[%s777_s22 + $0x8] sm:$0x1] %v612_v8 }
  0xa9   : >> { %638 = vsyncadd %s578_s9, 16 }
  0xaa PF: >> { %s563_s23 = sadd.s32 1, %s1154_s23  }
  0xab   : >> { %p560_p12 = scmp.ge.s32.totalorder %s563_s23, 8  }
  0xac   : > { %v640_v10 = vld [vmem:[%s1355_s1] sm:$0xff] (%p560_p12)  ;;  %vm642_vm0 = vcmask (%p560_p12), 261120   ;;  %s959_s6 = sshll.u32 (%p560_p12), %s1142_s19, 7  ;;  %s659_s23 = sshll.u32 (%p560_p12), %s129_s10, 4  ;;  %s1305_s23 = int_to_ptr.vmem [resolvable:$true] %s659_s23 }
  0xad   : > { %562 = sbr.rel (!%p560_p12) target bundleno = 143 (0x8f), region = 462  ;;  %s1301_s9 = scalar_lea.hbm (%p560_p12), %s1357_s3, %s959_s6 }
  0xae   : > { %s645_s4 = scalar_lea.sflag (%p560_p12), [#allocation7], %s127_s30  ;;  %s1064_s11 = scalar_lea.vmem (%p560_p12), %s1305_s23, 128 }
  0xaf   : > { %v639_v9 = vld [vmem:[#allocation2] sm:$0xff] (%p560_p12)  ;;  %p1065_p0 = scmp.ne.s32.totalorder (%p560_p12), %s1305_s23, %s1064_s11  ;;  %s1157_s19 = smov (%p560_p12), [#allocation6]  }
  0xb0   : > { %v641_v11 = vadd.f32 (%p560_p12), %v640_v10, %v639_v9  ;;  %s1068_s12 = sshll.u32 (%p560_p12), %s1157_s19, 4  ;;  %s1069_s12 = int_to_ptr.vmem [resolvable:$false] %s1068_s12 }
  0xb1   : > { %p1066_p1 = pnand (%p560_p12), %p1065_p0, %p1221_p9  ;;  %s1070_s13 = scalar_lea.vmem (%p560_p12), %s1069_s12, 256 }
  0xb2   : > { %643 = vst.msk [vmem:[%s129_s10] sm:$0xff] (%p560_p12), %vm642_vm0, %v641_v11  ;;  %p1071_p3 = scmp.lt.s32.totalorder (%p560_p12), %s1305_s23, %s1069_s12  ;;  %p1072_p4 = scmp.lt.s32.totalorder (%p560_p12), %s1070_s13, %s1064_s11 }
  0xb3   : > { %p1067_p2 = pneg (%p560_p12), %p1066_p1 }
  0xb4   : > { %p1073_p5 = por %p1072_p4, %p1071_p3 }
  0xb6   : > { %p1074_p6 = pnand %p1073_p5, %p1067_p2 }
  0xb8   : > { %1077 = shalt.err (!%p1074_p6)
}
  0xb9   : > { %s1078_s30 = scalar_lea.hbm %s1301_s9, 128  ;;  %s1082_s14 = scalar_lea.hbm %s1357_s3, 256 }
  0xba   : > { %p1079_p7 = scmp.ne.s32.totalorder %s1301_s9, %s1078_s30  ;;  %p1083_p11 = scmp.lt.u32.totalorder %s1301_s9, %s1357_s3 }
  0xbb   : > { %p1084_p12 = scmp.lt.u32.totalorder %s1082_s14, %s1078_s30  ;;  %p1086_p1 = scmp.lt.u32.totalorder %s1078_s30, %s1301_s9 }
  0xbc   : > { %p1080_p8 = pnand %p1079_p7, %p1221_p9 }
  0xbd   : > { %p1085_p0 = por %p1084_p12, %p1083_p11 }
  0xbe   : > { %p1081_p10 = pneg %p1080_p8 }
  0xbf   : > { %p1087_p2 = por %p1086_p1, %p1085_p0 }
  0xc1   : > { %p1088_p3 = pnand %p1087_p2, %p1081_p10 }
  0xc3   : > { %1091 = shalt.err (!%p1088_p3)
}
  0xc4   : > { %988 = dma.vmem_to_hbm [thread:$0]  (%p1221_p9), %s1305_s23, 128, %s1301_s9, %s645_s4  }
  0xc5 PF: > { %p994_p4 = scmp.ge.s32.totalorder %s1150_s21, 2  ;;  %s671_s22 = sand.u32 1, %s1130_s17  }
  0xc6   : > { %s672_s25 = scalar_lea.sflag [#allocation7], %s671_s22 }
  0xc7   : > { %p991_p5 = pnand %p994_p4, %p1228_p13 }
  0xc9   : > { %1125 = dma.done.wait (!%p991_p5), %s672_s25, 128  }
  0xca   : > { %1127 = vsyncadd (!%p991_p5), %s672_s25, 4294967168  ;;  %s22_s21 = sadd.s32 1, %s1150_s21   ;;  %s1360_s17 = smov %s1134_s18 }
  0xcb   : > { %p19_p6 = scmp.ge.s32.totalorder %s22_s21, 4   ;;  %s1361_s18 = smov %s1138_s0 }
  0xcc   : > { %s1362_s0 = smov %s1234_s29  ;;  %s1363_s19 = smov %s1146_s20 }
  0xcd   : > { %s1364_s20 = smov %s1366_s24  ;;  %21 = sbr.rel (!%p19_p6) target bundleno = 19 (0x13), region = 473 }
  0xd4   :  { %677 = vsyncpa [#allocation7], 1 }
  0xd5   :  { %679 = vsyncpa [#allocation7 + $0x1], 1 }
  0xd6   :  { %680 = vsyncmov [#allocation3] }
  0xd9   :  { %s681_s26 = vpop.sfrf %680 }
  0xda   :  { %p962_p9 = scmp.ne.s32.totalorder %s681_s26, 0 }
  0xdc   :  { %685 = shalt.err (%p962_p9)  }
  0xdd   :  { %687 = vsyncmov [#allocation3 + $0x1] }
  0xe0   :  { %s688_s28 = vpop.sfrf %687 }
  0xe1   :  { %p963_p13 = scmp.ne.s32.totalorder %s688_s28, 0 }
  0xe3   :  { %692 = shalt.err (%p963_p13)  }
  0xe4   :  { %694 = vsyncmov [#allocation3 + $0x2] }
  0xe7   :  { %s695_s27 = vpop.sfrf %694 }
  0xe8   :  { %p964_p7 = scmp.ne.s32.totalorder %s695_s27, 0 }
  0xea   :  { %699 = shalt.err (%p964_p7)  }
  0xeb   :  { %701 = vsyncmov [#allocation3 + $0x3] }
  0xee   :  { %s702_s29 = vpop.sfrf %701 }
  0xef   :  { %p965_p8 = scmp.ne.s32.totalorder %s702_s29, 0 }
  0xf1   :  { %706 = shalt.err (%p965_p8)  }
  0xf2   :  { %708 = vsyncmov [#allocation3 + $0x4] }
  0xf5   :  { %s709_s21 = vpop.sfrf %708 }
  0xf6   :  { %p966_p10 = scmp.ne.s32.totalorder %s709_s21, 0 }
  0xf8   :  { %713 = shalt.err (%p966_p10)  }
  0xf9   :  { %715 = vsyncmov [#allocation3 + $0x5] }
  0xfc   :  { %s716_s1 = vpop.sfrf %715 }
  0xfd   :  { %p967_p11 = scmp.ne.s32.totalorder %s716_s1, 0 }
  0xff   :  { %720 = shalt.err (%p967_p11)  }
 0x100   :  { %722 = vsyncmov [#allocation3 + $0x6] }
 0x103   :  { %s723_s2 = vpop.sfrf %722 }
 0x104   :  { %p968_p12 = scmp.ne.s32.totalorder %s723_s2, 0 }
 0x106   :  { %727 = shalt.err (%p968_p12)  }
 0x107   :  { %729 = vsyncmov [#allocation3 + $0x7] }
 0x10a   :  { %s730_s3 = vpop.sfrf %729 }
 0x10b   :  { %p969_p0 = scmp.ne.s32.totalorder %s730_s3, 0 }
 0x10d   :  { %734 = shalt.err (%p969_p0)  }

</bundles_post_ra>
